<compile_context>
chip_gen: v7x
topology: tpu7x:2x2x1
jax: 0.10.0
libtpu: 0.0.40
codegen_flags: <defaults>
</compile_context>

<pallas_src>
import functools

import jax
import jax.numpy as jnp
from jax.experimental import pallas as pl
from jax.experimental.pallas import tpu as pltpu

BN_EPS = 1e-5


def _round_up(a, b):
    return (a + b - 1) // b * b


def _vmem_budget_bytes():
    """Scoped-VMEM request sized to the TPU generation (v7x has 64 MiB/TC)."""
    try:
        cap = int(pltpu.get_tpu_info().vmem_capacity_bytes)
    except Exception:
        cap = 64 * 1024 * 1024          # conservative (v7x-sized) default
    # Leave roughly half of physical VMEM for compiler scratch / double buffers.
    return min(cap // 2, 48 * 1024 * 1024)


def _spec(block_shape, index_map, *, resident=False):
    """BlockSpec; resident (constant-index-map) blocks request single buffering."""
    if resident:
        try:
            return pl.BlockSpec(block_shape, index_map,
                                pipeline_mode=pl.Buffered(1))
        except Exception:
            pass
    return pl.BlockSpec(block_shape, index_map)


# --------------------------------------------------------------------------- #
# Fused single-pass kernel: stats + normalize + classifier matmul (x read once)
# --------------------------------------------------------------------------- #
def _fused_kernel(x1_ref, x2_ref, g1_ref, b1_ref, g2_ref, b2_ref, w_ref,
                  f1_ref, f2_ref, s1_ref, s2_ref, *, n_rows, bf16_affine):
    inv_n = jnp.float32(1.0 / n_rows)

    def one_stream(x_ref, g_ref, b_ref, f_ref, s_ref):
        x32 = x_ref[...].astype(jnp.float32)                     # (B, D)
        mean = jnp.sum(x32, axis=0, keepdims=True) * inv_n       # (1, D)
        xc = x32 - mean
        var = jnp.sum(xc * xc, axis=0, keepdims=True) * inv_n    # biased (PyTorch)
        inv_std = jax.lax.rsqrt(var + BN_EPS)
        scale = g_ref[...] * inv_std
        shift = b_ref[...] - mean * scale
        if bf16_affine:
            feat = (x_ref[...] * scale.astype(x_ref.dtype)
                    + shift.astype(x_ref.dtype))                  # 1 bf16 FMA/elem
        else:
            feat = x32 * scale + shift
        f_ref[...] = feat.astype(f_ref.dtype)
        score = jnp.dot(feat.astype(w_ref.dtype), w_ref[...],
                        preferred_element_type=jnp.float32)       # MXU, f32 acc
        s_ref[...] = score.astype(s_ref.dtype)

    one_stream(x1_ref, g1_ref, b1_ref, f1_ref, s1_ref)
    one_stream(x2_ref, g2_ref, b2_ref, f2_ref, s2_ref)


# --------------------------------------------------------------------------- #
# Tiled two-pass path (large B*D): pass 1 = streamed per-feature stats
# --------------------------------------------------------------------------- #
def _stats_kernel(x1_ref, x2_ref, g1_ref, b1_ref, g2_ref, b2_ref,
                  sc1_ref, sh1_ref, sc2_ref, sh2_ref,
                  acc1_ref, sq1_ref, acc2_ref, sq2_ref,
                  *, n_rows, tile_rows, masked):
    k = pl.program_id(0)

    @pl.when(k == 0)
    def _():
        acc1_ref[...] = jnp.zeros_like(acc1_ref)
        sq1_ref[...] = jnp.zeros_like(sq1_ref)
        acc2_ref[...] = jnp.zeros_like(acc2_ref)
        sq2_ref[...] = jnp.zeros_like(sq2_ref)

    def accumulate(x_ref, acc_ref, sq_ref):
        x = x_ref[...].astype(jnp.float32)                        # (TB, D)
        if masked:  # trace-time flag: zero contributions of out-of-range rows
            row = (k * tile_rows
                   + jax.lax.broadcasted_iota(jnp.int32, x.shape, 0))
            x = jnp.where(row < n_rows, x, 0.0)
        # Sublane-aligned (8, D) accumulation: pure VPU adds per tile, the
        # cross-sublane reduce and narrow (1, D) store are deferred to finalize.
        xr = x.reshape(tile_rows // 8, 8, x.shape[-1])
        acc_ref[...] += jnp.sum(xr, axis=0)
        sq_ref[...] += jnp.sum(xr * xr, axis=0)

    accumulate(x1_ref, acc1_ref, sq1_ref)
    accumulate(x2_ref, acc2_ref, sq2_ref)

    @pl.when(k == pl.num_programs(0) - 1)
    def _():
        inv_n = jnp.float32(1.0 / n_rows)

        def finalize(acc_ref, sq_ref, g_ref, b_ref, sc_ref, sh_ref):
            mean = jnp.sum(acc_ref[...], axis=0, keepdims=True) * inv_n
            ex2 = jnp.sum(sq_ref[...], axis=0, keepdims=True) * inv_n
            var = jnp.maximum(ex2 - mean * mean, 0.0)
            inv_std = jax.lax.rsqrt(var + BN_EPS)
            scale = g_ref[...] * inv_std
            sc_ref[...] = scale
            sh_ref[...] = b_ref[...] - mean * scale

        finalize(acc1_ref, sq1_ref, g1_ref, b1_ref, sc1_ref, sh1_ref)
        finalize(acc2_ref, sq2_ref, g2_ref, b2_ref, sc2_ref, sh2_ref)


# Pass 2: folded-BN normalize (1 FMA/elem) + shared classifier matmul (MXU)
def _apply_kernel(x1_ref, x2_ref, sc1_ref, sh1_ref, sc2_ref, sh2_ref, w_ref,
                  f1_ref, f2_ref, s1_ref, s2_ref, *, bf16_affine):
    def one_stream(x_ref, sc_ref, sh_ref, f_ref, s_ref):
        if bf16_affine:
            feat = (x_ref[...] * sc_ref[...].astype(x_ref.dtype)
                    + sh_ref[...].astype(x_ref.dtype))
        else:
            feat = x_ref[...].astype(jnp.float32) * sc_ref[...] + sh_ref[...]
        f_ref[...] = feat.astype(f_ref.dtype)
        score = jnp.dot(feat.astype(w_ref.dtype), w_ref[...],
                        preferred_element_type=jnp.float32)
        s_ref[...] = score.astype(s_ref.dtype)

    one_stream(x1_ref, sc1_ref, sh1_ref, f1_ref, s1_ref)
    one_stream(x2_ref, sc2_ref, sh2_ref, f2_ref, s2_ref)


# --------------------------------------------------------------------------- #
# Wrapper
# --------------------------------------------------------------------------- #
def bn_classifier_forward(x, x2, gamma, beta, gamma2, beta2, weight):
    """Training-mode BNClassifier forward.

    x, x2: (B, in_dim); gamma/beta(+2): (in_dim,); weight: (class_num, in_dim).
    Returns ([feature, feature2], [cls_score, cls_score2]).
    """
    B, D = x.shape
    assert x2.shape == (B, D)
    C = weight.shape[0]
    dt = x.dtype
    itemsize = jnp.dtype(dt).itemsize
    bf16_affine = (dt == jnp.bfloat16)
    budget = _vmem_budget_bytes()

    g1 = gamma.reshape(1, D).astype(jnp.float32)
    b1 = beta.reshape(1, D).astype(jnp.float32)
    g2 = gamma2.reshape(1, D).astype(jnp.float32)
    b2 = beta2.reshape(1, D).astype(jnp.float32)
    wt = weight.T.astype(dt)                                      # (D, C)

    out_feat = jax.ShapeDtypeStruct((B, D), dt)
    out_score = jax.ShapeDtypeStruct((B, C), dt)

    # ---- Fused single-pass path: pick when both streams fit in VMEM. ----
    fused_bytes = (2 * B * D * (2 * itemsize + 4)      # x in + feat out + f32 work
                   + 2 * B * max(C, 128) * 4           # score blocks (f32 accum)
                   + D * max(C, 128) * itemsize        # classifier weight
                   + 16 * D * 4)                       # per-feature temporaries
    if fused_bytes <= (budget * 3) // 4:
        kernel = functools.partial(_fused_kernel, n_rows=B,
                                   bf16_affine=bf16_affine)
        f1, f2, s1, s2 = pl.pallas_call(
            kernel,
            out_shape=(out_feat, out_feat, out_score, out_score),
            compiler_params=pltpu.CompilerParams(vmem_limit_bytes=budget),
        )(x, x2, g1, b1, g2, b2, wt)
        return [f1, f2], [s1, s2]

    # ---- Tiled two-pass path. Batch tile sized from a ~4 MB/stream target. ----
    target_tile_bytes = 4 * 1024 * 1024
    TB = target_tile_bytes // max(1, D * itemsize)
    TB = max(8, min(1024, TB))
    TB = (TB // 256) * 256 if TB >= 256 else (TB // 8) * 8        # MXU-friendly M
    TB = min(TB, _round_up(B, 8))
    TB = max(TB, 8)
    NT = -(-B // TB)
    masked = (B % TB) != 0

    stats_kernel = functools.partial(_stats_kernel, n_rows=B, tile_rows=TB,
                                     masked=masked)
    sc1, sh1, sc2, sh2 = pl.pallas_call(
        stats_kernel,
        out_shape=tuple(jax.ShapeDtypeStruct((1, D), jnp.float32)
                        for _ in range(4)),
        grid_spec=pltpu.PrefetchScalarGridSpec(
            num_scalar_prefetch=0,
            grid=(NT,),
            in_specs=[
                pl.BlockSpec((TB, D), lambda k: (k, 0)),
                pl.BlockSpec((TB, D), lambda k: (k, 0)),
                _spec((1, D), lambda k: (0, 0), resident=True),
                _spec((1, D), lambda k: (0, 0), resident=True),
                _spec((1, D), lambda k: (0, 0), resident=True),
                _spec((1, D), lambda k: (0, 0), resident=True),
            ],
            out_specs=[pl.BlockSpec((1, D), lambda k: (0, 0))
                       for _ in range(4)],
            scratch_shapes=[pltpu.VMEM((8, D), jnp.float32)
                            for _ in range(4)],
        ),
        compiler_params=pltpu.CompilerParams(
            dimension_semantics=("arbitrary",),
            vmem_limit_bytes=budget),
    )(x, x2, g1, b1, g2, b2)

    apply_kernel = functools.partial(_apply_kernel, bf16_affine=bf16_affine)
    f1, f2, s1, s2 = pl.pallas_call(
        apply_kernel,
        out_shape=(out_feat, out_feat, out_score, out_score),
        grid_spec=pltpu.PrefetchScalarGridSpec(
            num_scalar_prefetch=0,
            grid=(NT,),
            in_specs=[
                pl.BlockSpec((TB, D), lambda k: (k, 0)),
                pl.BlockSpec((TB, D), lambda k: (k, 0)),
                _spec((1, D), lambda k: (0, 0), resident=True),
                _spec((1, D), lambda k: (0, 0), resident=True),
                _spec((1, D), lambda k: (0, 0), resident=True),
                _spec((1, D), lambda k: (0, 0), resident=True),
                _spec((D, C), lambda k: (0, 0), resident=True),
            ],
            out_specs=[
                pl.BlockSpec((TB, D), lambda k: (k, 0)),
                pl.BlockSpec((TB, D), lambda k: (k, 0)),
                pl.BlockSpec((TB, C), lambda k: (k, 0)),
                pl.BlockSpec((TB, C), lambda k: (k, 0)),
            ],
        ),
        compiler_params=pltpu.CompilerParams(
            dimension_semantics=("parallel",),
            vmem_limit_bytes=budget),
    )(x, x2, sc1, sh1, sc2, sh2, wt)

    return [f1, f2], [s1, s2]


# --------------------------------------------------------------------------- #
# Pure-JAX reference
# --------------------------------------------------------------------------- #
def reference_forward(x, x2, gamma, beta, gamma2, beta2, weight):
    def bn(xi, g, b):
        xi32 = xi.astype(jnp.float32)
        mean = jnp.mean(xi32, axis=0, keepdims=True)
        var = jnp.mean((xi32 - mean) ** 2, axis=0, keepdims=True)
        return (xi32 - mean) / jnp.sqrt(var + BN_EPS) * g + b

    f1 = bn(x, gamma, beta)
    f2 = bn(x2, gamma2, beta2)
    w32 = weight.astype(jnp.float32)
    s1 = jnp.dot(f1, w32.T, precision=jax.lax.Precision.HIGHEST)
    s2 = jnp.dot(f2, w32.T, precision=jax.lax.Precision.HIGHEST)
    return ([f1.astype(x.dtype), f2.astype(x.dtype)],
            [s1.astype(x.dtype), s2.astype(x.dtype)])


if __name__ == "__main__":
    # Small shapes consistent with the module: batch=8, in_dim=32, classes=8.
    B, IN_DIM, CLASS_NUM = 8, 32, 8

    key = jax.random.PRNGKey(0)
    kx1, kx2, kw = jax.random.split(key, 3)

    x = jax.random.normal(kx1, (B, IN_DIM), dtype=jnp.float32)
    x2 = jax.random.normal(kx2, (B, IN_DIM), dtype=jnp.float32)

    # Parameter init mirroring the PyTorch module's __init__:
    #   BatchNorm1d (both): weight=1, bias=0 (weights_init_kaiming on BatchNorm)
    #   Linear(in_dim, class_num, bias=False): weight ~ N(0, 0.001)
    gamma = jnp.ones((IN_DIM,), jnp.float32)
    beta = jnp.zeros((IN_DIM,), jnp.float32)
    gamma2 = jnp.ones((IN_DIM,), jnp.float32)
    beta2 = jnp.zeros((IN_DIM,), jnp.float32)
    weight = 0.001 * jax.random.normal(kw, (CLASS_NUM, IN_DIM), dtype=jnp.float32)

    (f1, f2), (s1, s2) = bn_classifier_forward(
        x, x2, gamma, beta, gamma2, beta2, weight)
    jax.block_until_ready((f1, f2, s1, s2))

    (rf1, rf2), (rs1, rs2) = reference_forward(
        x, x2, gamma, beta, gamma2, beta2, weight)
    assert jnp.allclose(f1, rf1, atol=1e-4, rtol=1e-4), "feature mismatch"
    assert jnp.allclose(f2, rf2, atol=1e-4, rtol=1e-4), "feature2 mismatch"
    assert jnp.allclose(s1, rs1, atol=1e-4, rtol=1e-4), "cls_score mismatch"
    assert jnp.allclose(s2, rs2, atol=1e-4, rtol=1e-4), "cls_score2 mismatch"

    print("KERNEL_OK")
</pallas_src>

<mosaic_0001>
module attributes {stable_mosaic.version = 11 : i64} {
  func.func @_fused_kernel(%arg0: memref<8x32xf32, #tpu.memory_space<vmem>>, %arg1: memref<8x32xf32, #tpu.memory_space<vmem>>, %arg2: memref<1x32xf32, #tpu.memory_space<vmem>>, %arg3: memref<1x32xf32, #tpu.memory_space<vmem>>, %arg4: memref<1x32xf32, #tpu.memory_space<vmem>>, %arg5: memref<1x32xf32, #tpu.memory_space<vmem>>, %arg6: memref<32x8xf32, #tpu.memory_space<vmem>>, %arg7: memref<8x32xf32, #tpu.memory_space<vmem>>, %arg8: memref<8x32xf32, #tpu.memory_space<vmem>>, %arg9: memref<8x8xf32, #tpu.memory_space<vmem>>, %arg10: memref<8x8xf32, #tpu.memory_space<vmem>>) attributes {dimension_semantics = [], scalar_prefetch = 0 : i64, scratch_operands = 0 : i64, tpu.core_type = #tpu.core_type<tc>} {
    %c0 = arith.constant 0 : index
    %c0_0 = arith.constant 0 : index
    %0 = vector.load %arg0[%c0, %c0_0] : memref<8x32xf32, #tpu.memory_space<vmem>>, vector<8x32xf32>
    %cst = arith.constant dense<0.000000e+00> : vector<32xf32>
    %1 = vector.multi_reduction <add>, %0, %cst [0] : vector<8x32xf32> to vector<32xf32>
    %2 = vector.shape_cast %1 : vector<32xf32> to vector<1x32xf32>
    %cst_1 = arith.constant 1.250000e-01 : f32
    %3 = vector.broadcast %cst_1 : f32 to vector<1x32xf32>
    %4 = arith.mulf %2, %3 : vector<1x32xf32>
    %5 = vector.broadcast %4 : vector<1x32xf32> to vector<8x32xf32>
    %6 = arith.subf %0, %5 : vector<8x32xf32>
    %7 = arith.mulf %6, %6 : vector<8x32xf32>
    %cst_2 = arith.constant dense<0.000000e+00> : vector<32xf32>
    %8 = vector.multi_reduction <add>, %7, %cst_2 [0] : vector<8x32xf32> to vector<32xf32>
    %9 = vector.shape_cast %8 : vector<32xf32> to vector<1x32xf32>
    %cst_3 = arith.constant 1.250000e-01 : f32
    %10 = vector.broadcast %cst_3 : f32 to vector<1x32xf32>
    %11 = arith.mulf %9, %10 : vector<1x32xf32>
    %cst_4 = arith.constant 9.99999974E-6 : f32
    %12 = vector.broadcast %cst_4 : f32 to vector<1x32xf32>
    %13 = arith.addf %11, %12 : vector<1x32xf32>
    %14 = math.rsqrt %13 : vector<1x32xf32>
    %c0_5 = arith.constant 0 : index
    %c0_6 = arith.constant 0 : index
    %15 = vector.load %arg2[%c0_5, %c0_6] : memref<1x32xf32, #tpu.memory_space<vmem>>, vector<1x32xf32>
    %16 = arith.mulf %15, %14 : vector<1x32xf32>
    %c0_7 = arith.constant 0 : index
    %c0_8 = arith.constant 0 : index
    %17 = vector.load %arg3[%c0_7, %c0_8] : memref<1x32xf32, #tpu.memory_space<vmem>>, vector<1x32xf32>
    %18 = arith.mulf %4, %16 : vector<1x32xf32>
    %19 = arith.subf %17, %18 : vector<1x32xf32>
    %20 = vector.broadcast %16 : vector<1x32xf32> to vector<8x32xf32>
    %21 = arith.mulf %0, %20 : vector<8x32xf32>
    %22 = vector.broadcast %19 : vector<1x32xf32> to vector<8x32xf32>
    %23 = arith.addf %21, %22 : vector<8x32xf32>
    %c0_9 = arith.constant 0 : index
    %c0_10 = arith.constant 0 : index
    %24 = vector.load %arg7[%c0_9, %c0_10] : memref<8x32xf32, #tpu.memory_space<vmem>>, vector<8x32xf32>
    tpu.vector_store %arg7[%c0_9, %c0_10], %23 {strides = array<i32>} : memref<8x32xf32, #tpu.memory_space<vmem>>, vector<8x32xf32>,
    %c0_11 = arith.constant 0 : index
    %c0_12 = arith.constant 0 : index
    %25 = vector.load %arg6[%c0_11, %c0_12] : memref<32x8xf32, #tpu.memory_space<vmem>>, vector<32x8xf32>
    %cst_13 = arith.constant dense<0.000000e+00> : vector<8x8xf32>
    %26 = tpu.matmul %23, %25, %cst_13 {dimension_numbers = #tpu.dot_dimension_numbers<[1], [0], [0], [1], [0, 0, 1, 1], [], []>} : vector<8x32xf32>, vector<32x8xf32>, vector<8x8xf32> -> vector<8x8xf32>
    %c0_14 = arith.constant 0 : index
    %c0_15 = arith.constant 0 : index
    %27 = vector.load %arg9[%c0_14, %c0_15] : memref<8x8xf32, #tpu.memory_space<vmem>>, vector<8x8xf32>
    tpu.vector_store %arg9[%c0_14, %c0_15], %26 {strides = array<i32>} : memref<8x8xf32, #tpu.memory_space<vmem>>, vector<8x8xf32>,
    %c0_16 = arith.constant 0 : index
    %c0_17 = arith.constant 0 : index
    %28 = vector.load %arg1[%c0_16, %c0_17] : memref<8x32xf32, #tpu.memory_space<vmem>>, vector<8x32xf32>
    %cst_18 = arith.constant dense<0.000000e+00> : vector<32xf32>
    %29 = vector.multi_reduction <add>, %28, %cst_18 [0] : vector<8x32xf32> to vector<32xf32>
    %30 = vector.shape_cast %29 : vector<32xf32> to vector<1x32xf32>
    %cst_19 = arith.constant 1.250000e-01 : f32
    %31 = vector.broadcast %cst_19 : f32 to vector<1x32xf32>
    %32 = arith.mulf %30, %31 : vector<1x32xf32>
    %33 = vector.broadcast %32 : vector<1x32xf32> to vector<8x32xf32>
    %34 = arith.subf %28, %33 : vector<8x32xf32>
    %35 = arith.mulf %34, %34 : vector<8x32xf32>
    %cst_20 = arith.constant dense<0.000000e+00> : vector<32xf32>
    %36 = vector.multi_reduction <add>, %35, %cst_20 [0] : vector<8x32xf32> to vector<32xf32>
    %37 = vector.shape_cast %36 : vector<32xf32> to vector<1x32xf32>
    %cst_21 = arith.constant 1.250000e-01 : f32
    %38 = vector.broadcast %cst_21 : f32 to vector<1x32xf32>
    %39 = arith.mulf %37, %38 : vector<1x32xf32>
    %cst_22 = arith.constant 9.99999974E-6 : f32
    %40 = vector.broadcast %cst_22 : f32 to vector<1x32xf32>
    %41 = arith.addf %39, %40 : vector<1x32xf32>
    %42 = math.rsqrt %41 : vector<1x32xf32>
    %c0_23 = arith.constant 0 : index
    %c0_24 = arith.constant 0 : index
    %43 = vector.load %arg4[%c0_23, %c0_24] : memref<1x32xf32, #tpu.memory_space<vmem>>, vector<1x32xf32>
    %44 = arith.mulf %43, %42 : vector<1x32xf32>
    %c0_25 = arith.constant 0 : index
    %c0_26 = arith.constant 0 : index
    %45 = vector.load %arg5[%c0_25, %c0_26] : memref<1x32xf32, #tpu.memory_space<vmem>>, vector<1x32xf32>
    %46 = arith.mulf %32, %44 : vector<1x32xf32>
    %47 = arith.subf %45, %46 : vector<1x32xf32>
    %48 = vector.broadcast %44 : vector<1x32xf32> to vector<8x32xf32>
    %49 = arith.mulf %28, %48 : vector<8x32xf32>
    %50 = vector.broadcast %47 : vector<1x32xf32> to vector<8x32xf32>
    %51 = arith.addf %49, %50 : vector<8x32xf32>
    %c0_27 = arith.constant 0 : index
    %c0_28 = arith.constant 0 : index
    %52 = vector.load %arg8[%c0_27, %c0_28] : memref<8x32xf32, #tpu.memory_space<vmem>>, vector<8x32xf32>
    tpu.vector_store %arg8[%c0_27, %c0_28], %51 {strides = array<i32>} : memref<8x32xf32, #tpu.memory_space<vmem>>, vector<8x32xf32>,
    %c0_29 = arith.constant 0 : index
    %c0_30 = arith.constant 0 : index
    %53 = vector.load %arg6[%c0_29, %c0_30] : memref<32x8xf32, #tpu.memory_space<vmem>>, vector<32x8xf32>
    %cst_31 = arith.constant dense<0.000000e+00> : vector<8x8xf32>
    %54 = tpu.matmul %51, %53, %cst_31 {dimension_numbers = #tpu.dot_dimension_numbers<[1], [0], [0], [1], [0, 0, 1, 1], [], []>} : vector<8x32xf32>, vector<32x8xf32>, vector<8x8xf32> -> vector<8x8xf32>
    %c0_32 = arith.constant 0 : index
    %c0_33 = arith.constant 0 : index
    %55 = vector.load %arg10[%c0_32, %c0_33] : memref<8x8xf32, #tpu.memory_space<vmem>>, vector<8x8xf32>
    tpu.vector_store %arg10[%c0_32, %c0_33], %54 {strides = array<i32>} : memref<8x8xf32, #tpu.memory_space<vmem>>, vector<8x8xf32>,
    return
  }
}

</mosaic_0001>

<bundles_post_ra>
// kernel: tpu_custom_call.1
= control target key start
LH: loop header
LB: loop body
LE: loop exit
PB: predicated region body
PF: predicated region fallthrough
CT: control target
= control target key end

     0   :  { %16 = vsyncpa [#allocation3], 0  ;;  %s644_s0 = inlined_call_operand.vmem [shape: f32[8,32], index: 0, kind: input, shape index: {}]   ;;  %s645_s1 = inlined_call_operand.vmem [shape: f32[8,32], index: 1, kind: input, shape index: {}]   ;;  %s646_s2 = inlined_call_operand.vmem [shape: f32[1,32], index: 2, kind: input, shape index: {}]   ;;  %s647_s3 = inlined_call_operand.vmem [shape: f32[1,32], index: 3, kind: input, shape index: {}]   ;;  %s648_s4 = inlined_call_operand.vmem [shape: f32[1,32], index: 4, kind: input, shape index: {}]   ;;  %s649_s5 = inlined_call_operand.vmem [shape: f32[1,32], index: 5, kind: input, shape index: {}]   ;;  %s650_s6 = inlined_call_operand.vmem [shape: f32[32,8], index: 6, kind: input, shape index: {}]   ;;  %s651_s7 = inlined_call_operand.hbm [shape: f32[8,32], index: 7, kind: output, shape index: {0}]   ;;  %s652_s8 = inlined_call_operand.hbm [shape: f32[8,32], index: 8, kind: output, shape index: {1}]   ;;  %s653_s9 = inlined_call_operand.hbm [shape: f32[8,8], index: 9, kind: output, shape index: {2}]   ;;  %s654_s10 = inlined_call_operand.hbm [shape: f32[8,8], index: 10, kind: output, shape index: {3}]  }
   0x1   :  { %17 = vsyncpa [#allocation5], 0  ;;  %v75_v0 = vld [vmem:[%s650_s6] sm:$0xff]  ;;  %v76_v1 = vld [vmem:[%s650_s6 + $0x8] sm:$0xff]  ;;  %v479_v3 = vmov 0.0|0.0   ;;  %vm34_vm0 = vcmask 261120  }
   0x2   :  { %v77_v2 = vld [vmem:[%s650_s6 + $0x10] sm:$0xff]  ;;  %362 = vmatprep.subr.bf16.mxu0 %v479_v3  ;;  %368 = vmatprep.subr.bf16.mxu1 %v479_v3  ;;  %v363_v4 = vpack.c.bf16 %v76_v1, %v75_v0  ;;  %v78_v5 = vld [vmem:[%s650_s6 + $0x18] sm:$0xff]  ;;  %v556_v6 = vld [vmem:[%s644_s0] sm:$0xff]  ;;  %vm480_vm1 = vmmov 0   ;;  %v481_v7 = vmov 0.0  }
   0x3   :  { %348 = vmatprep.mubr.msk.f32.mxu0 %vm480_vm1, %v481_v7  ;;  %359 = vmatprep.mubr.msk.f32.mxu1 %vm480_vm1, %v481_v7  ;;  %v35_v8 = vsel %vm34_vm0, %v556_v6, 0.0  ;;  %v563_v9 = vld [vmem:[%s645_s1] sm:$0xff]  ;;  %v366_v10 = vpack.c.bf16 %v78_v5, %v77_v2 }
   0x4   :  { %364 = vmatpush3.bf16.msra.mxu0 %v363_v4  ;;  %370 = vmatpush3.bf16.msra.mxu1 %v363_v4  ;;  %v36_v11 = vrot.slane %v35_v8, 4  ;;  %v155_v12 = vsel %vm34_vm0, %v563_v9, 0.0 }
   0x5   :  { %365 = vmatprep.subr.bf16.mxu0 %v479_v3  ;;  %371 = vmatprep.subr.bf16.mxu1 %v479_v3  ;;  %v156_v13 = vrot.slane %v155_v12, 4 }
   0x6   :  { %18 = vsyncpa [#allocation8], 0  ;;  %v37_v14 = vadd.f32 %v36_v11, %v35_v8  ;;  %v61_v48 = vlaneseq  ;;  %v55_v50 = vld [vmem:[%s646_s2] sm:$0x1]  ;;  %s482_s2 = smov [#allocation4]  }
   0x7   :  { %v157_v15 = vadd.f32 %v156_v13, %v155_v12  ;;  %v175_v52 = vld [vmem:[%s648_s4] sm:$0x1]  ;;  %s483_s4 = smov [#allocation2]  }
   0x8   :  { %367 = vmatpush3.bf16.msra.mxu0 %v366_v10  ;;  %373 = vmatpush3.bf16.msra.mxu1 %v366_v10  ;;  %v38_v16 = vrot.slane %v37_v14, 2  ;;  %v62_v49 = vshrl.u32 %v61_v48, 7  ;;  %v57_v56 = vld [vmem:[%s647_s3] sm:$0x1]  ;;  %s289_s3 = sshll.u32 %s482_s2, 4  ;;  %s290_s3 = int_to_ptr.vmem [resolvable:$true] %s289_s3 }
   0x9   :  { %v158_v17 = vrot.slane %v157_v15, 2  ;;  %v177_v60 = vld [vmem:[%s649_s5] sm:$0x1]  ;;  %s279_s5 = sshll.u32 %s483_s4, 4  ;;  %s385_s30 = scalar_lea.vmem %s290_s3, 128  ;;  %s280_s5 = int_to_ptr.vmem [resolvable:$true] %s279_s5 }
   0xa   :  { %v39_v18 = vadd.f32 %v38_v16, %v37_v14  ;;  %v63_v51 = vsub.s32 0, %v62_v49  ;;  %p386_p0 = scmp.ne.s32.totalorder %s290_s3, %s385_s30  ;;  %p390_p1 = scmp.lt.s32.totalorder %s290_s3, %s290_s3 }
   0xb   :  { %v159_v19 = vadd.f32 %v158_v17, %v157_v15  ;;  %p391_p2 = scmp.lt.s32.totalorder %s385_s30, %s385_s30 }
   0xc   :  { %v40_v20 = vrot.slane %v39_v18, 1 }
   0xd   :  { %v160_v21 = vrot.slane %v159_v19, 1  ;;  %p392_p3 = por %p391_p2, %p390_p1 }
   0xe   :  { %v41_v22 = vadd.f32 %v40_v20, %v39_v18 }
   0xf   :  { %v161_v23 = vadd.f32 %v160_v21, %v159_v19  ;;  %p393_p4 = pnand %p392_p3, %p386_p0 }
  0x10   :  { %v42_v24 = vmul.f32 0.125, %v41_v22 }
  0x11   :  { %v162_v25 = vmul.f32 0.125, %v161_v23 }
  0x12   :  { %v43_v26 = vsub.f32 %v556_v6, %v42_v24 }
  0x13   :  { %v163_v27 = vsub.f32 %v563_v9, %v162_v25 }
  0x14   :  { %v44_v28 = vmul.f32 %v43_v26, %v43_v26 }
  0x15   :  { %v164_v29 = vmul.f32 %v163_v27, %v163_v27 }
  0x16   :  { %v45_v30 = vsel %vm34_vm0, %v44_v28, 0.0 }
  0x17   :  { %v46_v31 = vrot.slane %v45_v30, 4  ;;  %v165_v32 = vsel %vm34_vm0, %v164_v29, 0.0 }
  0x18   :  { %v166_v33 = vrot.slane %v165_v32, 4 }
  0x19   :  { %v47_v34 = vadd.f32 %v46_v31, %v45_v30 }
  0x1a   :  { %v167_v35 = vadd.f32 %v166_v33, %v165_v32 }
  0x1b   :  { %v48_v36 = vrot.slane %v47_v34, 2 }
  0x1c   :  { %v168_v37 = vrot.slane %v167_v35, 2 }
  0x1d   :  { %v49_v38 = vadd.f32 %v48_v36, %v47_v34 }
  0x1e   :  { %v169_v39 = vadd.f32 %v168_v37, %v167_v35 }
  0x1f   :  { %v50_v40 = vrot.slane %v49_v38, 1 }
  0x20   :  { %v170_v41 = vrot.slane %v169_v39, 1 }
  0x21   :  { %v51_v42 = vadd.f32 %v50_v40, %v49_v38 }
  0x22   :  { %v171_v43 = vadd.f32 %v170_v41, %v169_v39 }
  0x23   :  { %v52_v44 = vmul.f32 0.125, %v51_v42 }
  0x24   :  { %v172_v45 = vmul.f32 0.125, %v171_v43 }
  0x25   :  { %v53_v46 = vadd.f32 1e-05, %v52_v44 }
  0x26   :  { %v173_v47 = vadd.f32 1e-05, %v172_v45 }
  0x27   :  { %381 = vrsqrt.f32 %v53_v46 }
  0x28   :  { %383 = vrsqrt.f32 %v173_v47 }
  0x31   :  { %v382_v53 = vpop.eup %381 }
  0x32   :  { %v384_v54 = vpop.eup %383  ;;  %v56_v55 = vmul.f32 %v382_v53, %v55_v50 }
  0x33   :  { %v176_v57 = vmul.f32 %v384_v54, %v175_v52 }
  0x34   :  { %v58_v58 = vmul.f32 %v56_v55, %v42_v24  ;;  %v64_v59 = vrot.slane %v56_v55, %v63_v51 }
  0x35   :  { %v178_v61 = vmul.f32 %v176_v57, %v162_v25  ;;  %v184_v62 = vrot.slane %v176_v57, %v63_v51 }
  0x36   :  { %v59_v63 = vsub.f32 %v57_v56, %v58_v58  ;;  %v66_v0 = vmul.f32 %v64_v59, %v556_v6 }
  0x37   :  { %v179_v1 = vsub.f32 %v177_v60, %v178_v61  ;;  %v186_v2 = vmul.f32 %v184_v62, %v563_v9 }
  0x38   :  { %v71_v3 = vrot.slane %v59_v63, %v63_v51 }
  0x39   :  { %v191_v4 = vrot.slane %v179_v1, %v63_v51 }
  0x3a   :  { %v73_v5 = vadd.f32 %v71_v3, %v66_v0 }
  0x3b   :  { %v193_v7 = vadd.f32 %v191_v4, %v186_v2 }
  0x3c   :  { %349 = vmatmul.mubr.msk.f32.vlgmr.msra.gmra.mrb[0].mxu0 %vm34_vm0, %v73_v5  ;;  %74 = vst.msk [vmem:[#allocation2] sm:$0xff] %vm34_vm0, %v73_v5 }
  0x3d   :  { %360 = vmatmul.mubr.msk.f32.vlgmr.msra.gmra.mrb[0].mxu1 %vm34_vm0, %v193_v7  ;;  %194 = vst.msk [vmem:[#allocation4] sm:$0xff] %vm34_vm0, %v193_v7 }
  0x3e   :  { %396 = shalt.err (!%p393_p4)
}
  0x3f   :  { %s397_s13 = scalar_lea.hbm %s652_s8, 128 }
  0x40   :  { %p398_p5 = scmp.ne.s32.totalorder %s652_s8, %s397_s13  ;;  %p401_p6 = scmp.lt.u32.totalorder %s397_s13, %s652_s8 }
  0x42   :  { %p403_p7 = pnand %p401_p6, %p398_p5 }
  0x44   :  { %406 = shalt.err (!%p403_p7)
}
  0x45   :  { %292 = dma.vmem_to_hbm [thread:$0]  %s290_s3, 128, %s652_s8, [#allocation5]  }
  0x46   :  { %s407_s20 = scalar_lea.vmem %s280_s5, 128  ;;  %p412_p9 = scmp.lt.s32.totalorder %s280_s5, %s280_s5 }
  0x47   :  { %p408_p8 = scmp.ne.s32.totalorder %s280_s5, %s407_s20  ;;  %p413_p10 = scmp.lt.s32.totalorder %s407_s20, %s407_s20 }
  0x49   :  { %p414_p11 = por %p413_p10, %p412_p9 }
  0x4b   :  { %p415_p12 = pnand %p414_p11, %p408_p8 }
  0x4d   :  { %418 = shalt.err (!%p415_p12)
}
  0x4e   :  { %s419_s23 = scalar_lea.hbm %s651_s7, 128 }
  0x4f   :  { %p420_p13 = scmp.ne.s32.totalorder %s651_s7, %s419_s23  ;;  %p423_p0 = scmp.lt.u32.totalorder %s419_s23, %s651_s7 }
  0x51   :  { %p425_p1 = pnand %p423_p0, %p420_p13 }
  0x53   :  { %428 = shalt.err (!%p425_p1)
}
  0x54   :  { %282 = dma.vmem_to_hbm [thread:$0]  %s280_s5, 128, %s651_s7, [#allocation3]   ;;  %vm152_vm2 = vcmask 64512  }
  0x55   :  { %s484_s26 = smov [#allocation6]   ;;  %s485_s28 = smov [#allocation7]  }
  0x56   :  { %s299_s27 = sshll.u32 %s484_s26, 4  ;;  %s309_s29 = sshll.u32 %s485_s28, 4  ;;  %s300_s27 = int_to_ptr.vmem [resolvable:$true] %s299_s27  ;;  %s613_s29 = int_to_ptr.vmem [resolvable:$true] %s309_s29 }
  0x57   :  { %s429_s2 = scalar_lea.vmem %s300_s27, 128  ;;  %p434_p3 = scmp.lt.s32.totalorder %s300_s27, %s300_s27 }
  0x58   :  { %p430_p2 = scmp.ne.s32.totalorder %s300_s27, %s429_s2  ;;  %p435_p4 = scmp.lt.s32.totalorder %s429_s2, %s429_s2 }
  0x5a   :  { %p436_p5 = por %p435_p4, %p434_p3 }
  0x5c   :  { %p437_p6 = pnand %p436_p5, %p430_p2 }
 0x10f   :  { %v148_v6 = vpop.f32.mrb[0].mxu0 }
 0x110   :  { %153 = vst.msk [vmem:[#allocation6] sm:$0xff] %vm152_vm2, %v148_v6  ;;  %v268_v8 = vpop.f32.mrb[0].mxu1  ;;  %v350_v9 = vpop.f32.mrb[1].mxu0 }
 0x111   :  { %272 = vst.msk [vmem:[#allocation7] sm:$0xff] %vm152_vm2, %v268_v8  ;;  %v361_v10 = vpop.f32.mrb[1].mxu1 }
 0x112   :  { %440 = shalt.err (!%p437_p6)
}
 0x113   :  { %s441_s4 = scalar_lea.hbm %s653_s9, 128 }
 0x114   :  { %p442_p7 = scmp.ne.s32.totalorder %s653_s9, %s441_s4  ;;  %p445_p8 = scmp.lt.u32.totalorder %s441_s4, %s653_s9 }
 0x116   :  { %p447_p9 = pnand %p445_p8, %p442_p7 }
 0x118   :  { %450 = shalt.err (!%p447_p9)
}
 0x119   :  { %302 = dma.vmem_to_hbm [thread:$0]  %s300_s27, 128, %s653_s9, [#allocation5]  }
 0x11a   :  { %s451_s15 = scalar_lea.vmem %s613_s29, 128  ;;  %p456_p11 = scmp.lt.s32.totalorder %s613_s29, %s613_s29 }
 0x11b   :  { %p452_p10 = scmp.ne.s32.totalorder %s613_s29, %s451_s15  ;;  %p457_p12 = scmp.lt.s32.totalorder %s451_s15, %s451_s15 }
 0x11d   :  { %p458_p13 = por %p457_p12, %p456_p11 }
 0x11f   :  { %p459_p0 = pnand %p458_p13, %p452_p10 }
 0x121   :  { %462 = shalt.err (!%p459_p0)
}
 0x122   :  { %s463_s18 = scalar_lea.hbm %s654_s10, 128 }
 0x123   :  { %p464_p1 = scmp.ne.s32.totalorder %s654_s10, %s463_s18  ;;  %p467_p2 = scmp.lt.u32.totalorder %s463_s18, %s654_s10 }
 0x125   :  { %p469_p3 = pnand %p467_p2, %p464_p1 }
 0x127   :  { %472 = shalt.err (!%p469_p3)
}
 0x128   :  { %312 = dma.vmem_to_hbm [thread:$0]  %s613_s29, 128, %s654_s10, [#allocation8]  }
 0x129   :  { %473 = dma.done.wait [#allocation3], 128  }
 0x12a   :  { %474 = vsyncadd [#allocation3], 4294967168 }
 0x12b   :  { %475 = dma.done.wait [#allocation5], 256  }
 0x12c   :  { %476 = vsyncadd [#allocation5], 4294967040 }
 0x12d   :  { %477 = dma.done.wait [#allocation8], 128  }
 0x12e   :  { %478 = vsyncadd [#allocation8], 4294967168 }
 0x12f   :  { %325 = vsyncpa [#allocation3], 1 }
 0x130   :  { %326 = vsyncpa [#allocation5], 1 }
 0x131   :  { %327 = vsyncpa [#allocation8], 1 }

</bundles_post_ra>
